<compile_context>
chip_gen: v7x
topology: tpu7x:2x2x1
jax: 0.10.0
libtpu: 0.0.40
codegen_flags: <defaults>
</compile_context>

<pallas_src>
import functools

import jax
import jax.numpy as jnp
from jax.experimental import pallas as pl
from jax.experimental.pallas import tpu as pltpu

NUM_BOND_DIRECTION = 3
NUM_BOND_TYPE = 6
NUM_ATOM_TYPE = 120
NUM_CHIRALITY_TAG = 3
BN_EPS = 1e-5

LANE = 128
SUBLANE = 8
MAX_ROW_TILE = 512  # row-tile upper bound; sized to fit v7x (64 MiB VMEM)


def round_up(x, m):
    return ((x + m - 1) // m) * m


# ----------------------------------------------------------------------------
# Kernel A: aggregation matmul + GIN MLP + masked partial batch statistics
# ----------------------------------------------------------------------------
def gin_mlp_stats_kernel(tmat_ref, msg_ref, w1_ref, b1_ref, w2_ref, b2_ref,
                         z2_ref, stats_ref, *, tm, n_valid):
    # 'add' aggregation (incl. self loops) as ONE (TM, E) x (E, D) MXU matmul.
    aggr = jnp.dot(tmat_ref[...], msg_ref[...],
                   preferred_element_type=jnp.float32)
    # GIN update MLP: Linear(D, 2D) -> ReLU -> Linear(2D, D).
    # bf16 operands, f32 accumulation.
    z1 = jnp.dot(aggr.astype(jnp.bfloat16), w1_ref[...],
                 preferred_element_type=jnp.float32) + b1_ref[...]
    z1 = jnp.maximum(z1, 0.0)
    z2 = jnp.dot(z1.astype(jnp.bfloat16), w2_ref[...],
                 preferred_element_type=jnp.float32) + b2_ref[...]
    z2_ref[...] = z2

    # Per-tile partial BatchNorm statistics; mask out padded node rows so the
    # global mean/var are computed over exactly the real N nodes.
    row = (pl.program_id(0) * tm
           + jax.lax.broadcasted_iota(jnp.int32, (tm, 1), 0))
    valid = (row < n_valid).astype(jnp.float32)
    z2m = z2 * valid
    s1 = jnp.sum(z2m, axis=0, keepdims=True)          # (1, D) sum
    s2 = jnp.sum(z2m * z2m, axis=0, keepdims=True)    # (1, D) sum of squares
    d = z2.shape[1]
    stats_ref[...] = jnp.concatenate(
        [s1, s2, jnp.zeros((SUBLANE - 2, d), jnp.float32)], axis=0)


# ----------------------------------------------------------------------------
# Kernel B: apply BatchNorm (global stats folded into scale/shift) + ReLU
# ----------------------------------------------------------------------------
def bn_relu_kernel(z_ref, scale_ref, shift_ref, out_ref, *, apply_relu):
    y = z_ref[...] * scale_ref[...] + shift_ref[...]
    if apply_relu:
        y = jnp.maximum(y, 0.0)
    out_ref[...] = y


# ----------------------------------------------------------------------------
# One GIN layer = kernel A -> tiny glue reduction -> kernel B
# ----------------------------------------------------------------------------
def gin_layer(tmat, msg, lp, n_valid, tm, apply_relu):
    n_pad, e_pad = tmat.shape
    d_pad = msg.shape[1]
    hid_pad = lp["w1"].shape[1]
    nt = n_pad // tm

    cp = pltpu.CompilerParams(
        dimension_semantics=("parallel",),        # megacore sharding on v7x
        vmem_limit_bytes=48 * 1024 * 1024,
    )

    mlp_fn = pl.pallas_call(
        functools.partial(gin_mlp_stats_kernel, tm=tm, n_valid=n_valid),
        out_shape=(
            jax.ShapeDtypeStruct((n_pad, d_pad), jnp.float32),
            jax.ShapeDtypeStruct((nt * SUBLANE, d_pad), jnp.float32),
        ),
        grid_spec=pltpu.PrefetchScalarGridSpec(
            num_scalar_prefetch=0,
            grid=(nt,),
            in_specs=[
                pl.BlockSpec((tm, e_pad), lambda i: (i, 0)),       # tmat tile
                pl.BlockSpec((e_pad, d_pad), lambda i: (0, 0)),    # msg (resident)
                pl.BlockSpec((d_pad, hid_pad), lambda i: (0, 0)),  # w1
                pl.BlockSpec((1, hid_pad), lambda i: (0, 0)),      # b1
                pl.BlockSpec((hid_pad, d_pad), lambda i: (0, 0)),  # w2
                pl.BlockSpec((1, d_pad), lambda i: (0, 0)),        # b2
            ],
            out_specs=[
                pl.BlockSpec((tm, d_pad), lambda i: (i, 0)),       # z2 tile
                pl.BlockSpec((SUBLANE, d_pad), lambda i: (i, 0)),  # partial stats
            ],
        ),
        compiler_params=cp,
    )
    z2, stats = mlp_fn(tmat, msg, lp["w1"], lp["b1"], lp["w2"], lp["b2"])

    # Reduce per-tile partials to global batch statistics (tiny glue).
    st = stats.reshape(nt, SUBLANE, d_pad)
    s1 = jnp.sum(st[:, 0, :], axis=0)
    s2 = jnp.sum(st[:, 1, :], axis=0)
    mean = s1 / n_valid
    var = jnp.maximum(s2 / n_valid - mean * mean, 0.0)  # biased (training-mode) var
    scale = (lp["bn_gamma"][0] * jax.lax.rsqrt(var + BN_EPS))[None, :]
    shift = (lp["bn_beta"][0] - mean * scale[0])[None, :]

    bn_fn = pl.pallas_call(
        functools.partial(bn_relu_kernel, apply_relu=apply_relu),
        out_shape=jax.ShapeDtypeStruct((n_pad, d_pad), jnp.float32),
        grid_spec=pltpu.PrefetchScalarGridSpec(
            num_scalar_prefetch=0,
            grid=(nt,),
            in_specs=[
                pl.BlockSpec((tm, d_pad), lambda i: (i, 0)),
                pl.BlockSpec((1, d_pad), lambda i: (0, 0)),
                pl.BlockSpec((1, d_pad), lambda i: (0, 0)),
            ],
            out_specs=pl.BlockSpec((tm, d_pad), lambda i: (i, 0)),
        ),
        compiler_params=cp,
    )
    return bn_fn(z2, scale, shift)


# ----------------------------------------------------------------------------
# Parameter initialization (deterministic, feature dims padded to LANE width)
# ----------------------------------------------------------------------------
def xavier_uniform(key, shape):
    fan_out, fan_in = shape
    bound = (6.0 / (fan_in + fan_out)) ** 0.5
    return jax.random.uniform(key, shape, jnp.float32, -bound, bound)


def pad2(a, rows, cols):
    return jnp.pad(a, ((0, rows - a.shape[0]), (0, cols - a.shape[1])))


def linear_init(key, fan_in, fan_out):
    k1, k2 = jax.random.split(key)
    bound = 1.0 / (fan_in ** 0.5)
    w = jax.random.uniform(k1, (fan_in, fan_out), jnp.float32, -bound, bound)
    b = jax.random.uniform(k2, (1, fan_out), jnp.float32, -bound, bound)
    return w, b


def init_gnn_params(key, num_layer, emb_dim, d_pad, hid_pad):
    keys = jax.random.split(key, 2 + 4 * num_layer)
    params = {
        "x_embedding1": pad2(
            xavier_uniform(keys[0], (NUM_ATOM_TYPE, emb_dim)),
            NUM_ATOM_TYPE, d_pad),
        "x_embedding2": pad2(
            xavier_uniform(keys[1], (NUM_CHIRALITY_TAG, emb_dim)),
            NUM_CHIRALITY_TAG, d_pad),
        "layers": [],
    }
    # NOTE: x_lin1 / x_lin2 / uniformity_layer exist in __init__ but are never
    # used in forward(); intentionally not instantiated.
    hid = 2 * emb_dim
    for layer in range(num_layer):
        k = keys[2 + 4 * layer: 2 + 4 * (layer + 1)]
        w1, b1 = linear_init(k[0], emb_dim, hid)
        w2, b2 = linear_init(k[1], hid, emb_dim)
        gamma = jnp.zeros((1, d_pad), jnp.float32).at[0, :emb_dim].set(1.0)
        params["layers"].append({
            "w1": pad2(w1, d_pad, hid_pad).astype(jnp.bfloat16),
            "b1": pad2(b1, 1, hid_pad),
            "w2": pad2(w2, hid_pad, d_pad).astype(jnp.bfloat16),
            "b2": pad2(b2, 1, d_pad),
            "edge_embedding1": pad2(
                xavier_uniform(k[2], (NUM_BOND_TYPE, emb_dim)),
                NUM_BOND_TYPE, d_pad),
            "edge_embedding2": pad2(
                xavier_uniform(k[3], (NUM_BOND_DIRECTION, emb_dim)),
                NUM_BOND_DIRECTION, d_pad),
            "bn_gamma": gamma,                       # padded features -> 0
            "bn_beta": jnp.zeros((1, d_pad), jnp.float32),
        })
    return params


# ----------------------------------------------------------------------------
# Forward pass (JK='last', drop_ratio=0)
# ----------------------------------------------------------------------------
def gnn_forward(params, x, edge_index, edge_attr, num_layer, emb_dim,
                JK="last"):
    n = x.shape[0]
    d_pad = params["x_embedding1"].shape[1]

    tm = min(MAX_ROW_TILE, round_up(n, SUBLANE))
    n_pad = round_up(n, tm)

    # node embedding lookup (glue) + pad node rows
    h0 = params["x_embedding1"][x[:, 0]] + params["x_embedding2"][x[:, 1]]
    h0 = jnp.pad(h0, ((0, n_pad - n), (0, 0)))

    # add self loops (self-loop bond type = 4, direction = 0)
    loops = jnp.arange(n, dtype=edge_index.dtype)
    edge_index_full = jnp.concatenate(
        [edge_index, jnp.stack([loops, loops])], axis=1)
    self_loop_attr = jnp.zeros((n, 2), dtype=edge_attr.dtype).at[:, 0].set(4)
    edge_attr_full = jnp.concatenate([edge_attr, self_loop_attr], axis=0)

    src = edge_index_full[0]   # x_j flows source -> target (PyG default)
    tgt = edge_index_full[1]
    e_total = edge_index_full.shape[1]
    e_pad = round_up(e_total, LANE)

    # one-hot edge -> target-node scatter matrix; graph is fixed, so build it
    # ONCE and share across layers.  bf16 0/1 is exact and halves the bytes.
    tmat = jnp.zeros((n_pad, e_pad), jnp.float32).at[
        tgt, jnp.arange(e_total)].set(1.0).astype(jnp.bfloat16)

    h_list = [h0]
    for layer in range(num_layer):
        lp = params["layers"][layer]
        edge_emb = (lp["edge_embedding1"][edge_attr_full[:, 0]]
                    + lp["edge_embedding2"][edge_attr_full[:, 1]])
        # msg = x_j + edge_attr; the A @ h term is folded into T @ msg, so the
        # dense N x N adjacency never exists.
        msg = h_list[layer][src] + edge_emb
        msg = jnp.pad(msg, ((0, e_pad - e_total), (0, 0))).astype(jnp.bfloat16)
        apply_relu = layer != num_layer - 1
        # TODO(synk): dropout with drop_ratio > 0 not implemented
        #             (drop_ratio = 0 here -> identity).
        h_list.append(gin_layer(tmat, msg, lp, n, tm, apply_relu))

    # un-pad (drop padded node rows / feature lanes) before JK combination
    hs = [h[:n, :emb_dim] for h in h_list]
    if JK == "last":
        return hs[-1]
    elif JK == "concat":
        return jnp.concatenate(hs, axis=1)
    elif JK == "max":
        return jnp.max(jnp.stack(hs, axis=0), axis=0)
    elif JK == "sum":
        return jnp.sum(jnp.stack(hs, axis=0), axis=0)
    raise ValueError(JK)


if __name__ == "__main__":
    num_layer = 3
    emb_dim = 32
    num_nodes = 8
    num_edges = 16

    d_pad = round_up(emb_dim, LANE)
    hid_pad = round_up(2 * emb_dim, LANE)

    key = jax.random.PRNGKey(0)
    k_param, k_x1, k_x2, k_src, k_tgt, k_e1, k_e2 = jax.random.split(key, 7)

    params = init_gnn_params(k_param, num_layer, emb_dim, d_pad, hid_pad)

    # batch.x: (num_nodes, 2) int node features [atom type, chirality tag]
    x = jnp.stack([
        jax.random.randint(k_x1, (num_nodes,), 0, NUM_ATOM_TYPE),
        jax.random.randint(k_x2, (num_nodes,), 0, NUM_CHIRALITY_TAG),
    ], axis=1).astype(jnp.int32)

    # batch.edge_index: (2, num_edges) int, batch.edge_attr: (num_edges, 2) int
    edge_index = jnp.stack([
        jax.random.randint(k_src, (num_edges,), 0, num_nodes),
        jax.random.randint(k_tgt, (num_edges,), 0, num_nodes),
    ], axis=0).astype(jnp.int32)
    edge_attr = jnp.stack([
        jax.random.randint(k_e1, (num_edges,), 0, NUM_BOND_TYPE),
        jax.random.randint(k_e2, (num_edges,), 0, NUM_BOND_DIRECTION),
    ], axis=1).astype(jnp.int32)

    out = gnn_forward(params, x, edge_index, edge_attr, num_layer, emb_dim,
                      JK="last")
    out = jax.block_until_ready(out)
    assert out.shape == (num_nodes, emb_dim), out.shape
    assert jnp.all(jnp.isfinite(out))
    print("KERNEL_OK")
</pallas_src>

<mosaic_0001>
module attributes {stable_mosaic.version = 11 : i64} {
  func.func @gin_mlp_stats_kernel(%arg0: i32, %arg1: memref<8x128xbf16, #tpu.memory_space<vmem>>, %arg2: memref<128x128xbf16, #tpu.memory_space<vmem>>, %arg3: memref<128x128xbf16, #tpu.memory_space<vmem>>, %arg4: memref<1x128xf32, #tpu.memory_space<vmem>>, %arg5: memref<128x128xbf16, #tpu.memory_space<vmem>>, %arg6: memref<1x128xf32, #tpu.memory_space<vmem>>, %arg7: memref<8x128xf32, #tpu.memory_space<vmem>>, %arg8: memref<8x128xf32, #tpu.memory_space<vmem>>) attributes {dimension_semantics = [#tpu.dimension_semantics<parallel>], iteration_bounds = array<i64: 1>, scalar_prefetch = 0 : i64, scratch_operands = 0 : i64, tpu.core_type = #tpu.core_type<tc>, window_params = [{transform_indices = @transform_0, window_bounds = array<i64: 8, 128>}, {pipeline_mode = #tpu.pipeline_mode<synchronous>, transform_indices = @transform_1, window_bounds = array<i64: 128, 128>}, {pipeline_mode = #tpu.pipeline_mode<synchronous>, transform_indices = @transform_2, window_bounds = array<i64: 128, 128>}, {pipeline_mode = #tpu.pipeline_mode<synchronous>, transform_indices = @transform_3, window_bounds = array<i64: 1, 128>}, {pipeline_mode = #tpu.pipeline_mode<synchronous>, transform_indices = @transform_4, window_bounds = array<i64: 128, 128>}, {pipeline_mode = #tpu.pipeline_mode<synchronous>, transform_indices = @transform_5, window_bounds = array<i64: 1, 128>}, {transform_indices = @transform_6, window_bounds = array<i64: 8, 128>}, {transform_indices = @transform_7, window_bounds = array<i64: 8, 128>}]} {
    %c0 = arith.constant 0 : index
    %c0_0 = arith.constant 0 : index
    %0 = vector.load %arg1[%c0, %c0_0] : memref<8x128xbf16, #tpu.memory_space<vmem>>, vector<8x128xbf16>
    %c0_1 = arith.constant 0 : index
    %c0_2 = arith.constant 0 : index
    %1 = vector.load %arg2[%c0_1, %c0_2] : memref<128x128xbf16, #tpu.memory_space<vmem>>, vector<128x128xbf16>
    %cst = arith.constant dense<0.000000e+00> : vector<8x128xf32>
    %2 = tpu.matmul %0, %1, %cst {dimension_numbers = #tpu.dot_dimension_numbers<[1], [0], [0], [1], [0, 0, 1, 1], [], []>} : vector<8x128xbf16>, vector<128x128xbf16>, vector<8x128xf32> -> vector<8x128xf32>
    %3 = arith.truncf %2 : vector<8x128xf32> to vector<8x128xbf16>
    %c0_3 = arith.constant 0 : index
    %c0_4 = arith.constant 0 : index
    %4 = vector.load %arg3[%c0_3, %c0_4] : memref<128x128xbf16, #tpu.memory_space<vmem>>, vector<128x128xbf16>
    %cst_5 = arith.constant dense<0.000000e+00> : vector<8x128xf32>
    %5 = tpu.matmul %3, %4, %cst_5 {dimension_numbers = #tpu.dot_dimension_numbers<[1], [0], [0], [1], [0, 0, 1, 1], [], []>} : vector<8x128xbf16>, vector<128x128xbf16>, vector<8x128xf32> -> vector<8x128xf32>
    %c0_6 = arith.constant 0 : index
    %c0_7 = arith.constant 0 : index
    %6 = vector.load %arg4[%c0_6, %c0_7] : memref<1x128xf32, #tpu.memory_space<vmem>>, vector<1x128xf32>
    %7 = vector.broadcast %6 : vector<1x128xf32> to vector<8x128xf32>
    %8 = arith.addf %5, %7 : vector<8x128xf32>
    %cst_8 = arith.constant 0.000000e+00 : f32
    %9 = vector.broadcast %cst_8 : f32 to vector<8x128xf32>
    %10 = arith.maximumf %8, %9 : vector<8x128xf32>
    %11 = arith.truncf %10 : vector<8x128xf32> to vector<8x128xbf16>
    %c0_9 = arith.constant 0 : index
    %c0_10 = arith.constant 0 : index
    %12 = vector.load %arg5[%c0_9, %c0_10] : memref<128x128xbf16, #tpu.memory_space<vmem>>, vector<128x128xbf16>
    %cst_11 = arith.constant dense<0.000000e+00> : vector<8x128xf32>
    %13 = tpu.matmul %11, %12, %cst_11 {dimension_numbers = #tpu.dot_dimension_numbers<[1], [0], [0], [1], [0, 0, 1, 1], [], []>} : vector<8x128xbf16>, vector<128x128xbf16>, vector<8x128xf32> -> vector<8x128xf32>
    %c0_12 = arith.constant 0 : index
    %c0_13 = arith.constant 0 : index
    %14 = vector.load %arg6[%c0_12, %c0_13] : memref<1x128xf32, #tpu.memory_space<vmem>>, vector<1x128xf32>
    %15 = vector.broadcast %14 : vector<1x128xf32> to vector<8x128xf32>
    %16 = arith.addf %13, %15 : vector<8x128xf32>
    %c0_14 = arith.constant 0 : index
    %c0_15 = arith.constant 0 : index
    %17 = vector.load %arg7[%c0_14, %c0_15] : memref<8x128xf32, #tpu.memory_space<vmem>>, vector<8x128xf32>
    tpu.vector_store %arg7[%c0_14, %c0_15], %16 {strides = array<i32>} : memref<8x128xf32, #tpu.memory_space<vmem>>, vector<8x128xf32>,
    %c8_i32 = arith.constant 8 : i32
    %18 = arith.muli %arg0, %c8_i32 : i32
    %19 = tpu.iota {dimensions = array<i32: 0>} : vector<8x1xi32>
    %20 = vector.broadcast %18 : i32 to vector<8x1xi32>
    %21 = arith.addi %20, %19 : vector<8x1xi32>
    %c8_i32_16 = arith.constant 8 : i32
    %22 = vector.broadcast %c8_i32_16 : i32 to vector<8x1xi32>
    %23 = arith.cmpi slt, %21, %22 : vector<8x1xi32>
    %24 = arith.extui %23 : vector<8x1xi1> to vector<8x1xi32>
    %25 = arith.sitofp %24 : vector<8x1xi32> to vector<8x1xf32>
    %26 = vector.broadcast %25 : vector<8x1xf32> to vector<8x128xf32>
    %27 = arith.mulf %16, %26 : vector<8x128xf32>
    %cst_17 = arith.constant dense<0.000000e+00> : vector<128xf32>
    %28 = vector.multi_reduction <add>, %27, %cst_17 [0] : vector<8x128xf32> to vector<128xf32>
    %29 = vector.shape_cast %28 : vector<128xf32> to vector<1x128xf32>
    %30 = arith.mulf %27, %27 : vector<8x128xf32>
    %cst_18 = arith.constant dense<0.000000e+00> : vector<128xf32>
    %31 = vector.multi_reduction <add>, %30, %cst_18 [0] : vector<8x128xf32> to vector<128xf32>
    %32 = vector.shape_cast %31 : vector<128xf32> to vector<1x128xf32>
    %cst_19 = arith.constant 0.000000e+00 : f32
    %33 = vector.broadcast %cst_19 : f32 to vector<6x128xf32>
    %34 = tpu.concatenate %29, %32, %33 in 0 : vector<1x128xf32>, vector<1x128xf32>, vector<6x128xf32> -> vector<8x128xf32>
    %c0_20 = arith.constant 0 : index
    %c0_21 = arith.constant 0 : index
    %35 = vector.load %arg8[%c0_20, %c0_21] : memref<8x128xf32, #tpu.memory_space<vmem>>, vector<8x128xf32>
    tpu.vector_store %arg8[%c0_20, %c0_21], %34 {strides = array<i32>} : memref<8x128xf32, #tpu.memory_space<vmem>>, vector<8x128xf32>,
    return
  }
  func.func @transform_0(%arg0: i32) -> (i32, i32) {
    %c0_i32 = arith.constant 0 : i32
    %c0_i32_0 = arith.constant 0 : i32
    return %arg0, %c0_i32 : i32, i32
  }
  func.func @transform_1(%arg0: i32) -> (i32, i32) {
    %c0_i32 = arith.constant 0 : i32
    %c0_i32_0 = arith.constant 0 : i32
    %c0_i32_1 = arith.constant 0 : i32
    return %c0_i32, %c0_i32_0 : i32, i32
  }
  func.func @transform_2(%arg0: i32) -> (i32, i32) {
    %c0_i32 = arith.constant 0 : i32
    %c0_i32_0 = arith.constant 0 : i32
    %c0_i32_1 = arith.constant 0 : i32
    return %c0_i32, %c0_i32_0 : i32, i32
  }
  func.func @transform_3(%arg0: i32) -> (i32, i32) {
    %c0_i32 = arith.constant 0 : i32
    %c0_i32_0 = arith.constant 0 : i32
    %c0_i32_1 = arith.constant 0 : i32
    return %c0_i32, %c0_i32_0 : i32, i32
  }
  func.func @transform_4(%arg0: i32) -> (i32, i32) {
    %c0_i32 = arith.constant 0 : i32
    %c0_i32_0 = arith.constant 0 : i32
    %c0_i32_1 = arith.constant 0 : i32
    return %c0_i32, %c0_i32_0 : i32, i32
  }
  func.func @transform_5(%arg0: i32) -> (i32, i32) {
    %c0_i32 = arith.constant 0 : i32
    %c0_i32_0 = arith.constant 0 : i32
    %c0_i32_1 = arith.constant 0 : i32
    return %c0_i32, %c0_i32_0 : i32, i32
  }
  func.func @transform_6(%arg0: i32) -> (i32, i32) {
    %c0_i32 = arith.constant 0 : i32
    %c0_i32_0 = arith.constant 0 : i32
    return %arg0, %c0_i32 : i32, i32
  }
  func.func @transform_7(%arg0: i32) -> (i32, i32) {
    %c0_i32 = arith.constant 0 : i32
    %c0_i32_0 = arith.constant 0 : i32
    return %arg0, %c0_i32 : i32, i32
  }
}

</mosaic_0001>

<bundles_post_ra>
// kernel: tpu_custom_call.1
= control target key start
LH: loop header
LB: loop body
LE: loop exit
PB: predicated region body
PF: predicated region fallthrough
CT: control target
= control target key end

     0   :  { %13 = vsyncpa [#allocation3], 0  ;;  %s926_s0 = inlined_call_operand.hbm [shape: bf16[8,128], index: 0, kind: input, shape index: {}]   ;;  %s927_s1 = inlined_call_operand.hbm [shape: bf16[128,128], index: 1, kind: input, shape index: {}]   ;;  %s928_s2 = inlined_call_operand.hbm [shape: bf16[128,128], index: 2, kind: input, shape index: {}]   ;;  %s929_s3 = inlined_call_operand.vmem [shape: f32[1,128], index: 3, kind: input, shape index: {}]   ;;  %s930_s4 = inlined_call_operand.hbm [shape: bf16[128,128], index: 4, kind: input, shape index: {}]   ;;  %s931_s5 = inlined_call_operand.vmem [shape: f32[1,128], index: 5, kind: input, shape index: {}]   ;;  %s932_s6 = inlined_call_operand.hbm [shape: f32[8,128], index: 6, kind: output, shape index: {0}]   ;;  %s933_s7 = inlined_call_operand.hbm [shape: f32[8,128], index: 7, kind: output, shape index: {1}]  }
   0x1   :  { %14 = vsyncpa [#allocation6], 0 }
   0x2   :  { %15 = vsyncpa [#allocation9], 0 }
   0x3   :  { %16 = vsyncpa [#allocation4], 0 }
   0x4   :  { %17 = vsyncpa [#allocation12], 0  ;;  %s759_s24 = smov [#allocation5]   ;;  %s617_s28 = scalar_lea.hbm %s927_s1, 1024 }
   0x5   :  { %s33_s25 = sshll.u32 %s759_s24, 4  ;;  %p618_p0 = scmp.ne.s32.totalorder %s927_s1, %s617_s28  ;;  %s34_s25 = int_to_ptr.vmem [resolvable:$true] %s33_s25 }
   0x6   :  { %p621_p1 = scmp.lt.u32.totalorder %s617_s28, %s927_s1 }
   0x8   :  { %p623_p2 = pnand %p621_p1, %p618_p0 }
   0xa   :  { %626 = shalt.err (!%p623_p2)
}
   0xb   :  { %s627_s10 = scalar_lea.vmem %s34_s25, 1024  ;;  %p632_p4 = scmp.lt.s32.totalorder %s34_s25, %s34_s25 }
   0xc   :  { %p628_p3 = scmp.ne.s32.totalorder %s34_s25, %s627_s10  ;;  %p633_p5 = scmp.lt.s32.totalorder %s627_s10, %s627_s10 }
   0xe   :  { %p634_p6 = por %p633_p5, %p632_p4 }
  0x10   :  { %p635_p7 = pnand %p634_p6, %p628_p3 }
  0x12   :  { %638 = shalt.err (!%p635_p7)
}
  0x13   :  { %s760_s11 = smov 64   ;;  %s761_s12 = smov 4  }
  0x14   :  { %39 = dma.hbm_to_vmem [thread:$0]  %s927_s1, 1024, %s34_s25, [#allocation6], %s760_s11, %s760_s11, %s761_s12  }
  0x15   :  { %s762_s15 = smov [#allocation2]   ;;  %s763_s17 = smov [#allocation7]  }
  0x16   :  { %s24_s16 = sshll.u32 %s762_s15, 4  ;;  %s45_s18 = sshll.u32 %s763_s17, 4  ;;  %s25_s16 = int_to_ptr.vmem [resolvable:$true] %s24_s16  ;;  %s46_s18 = int_to_ptr.vmem [resolvable:$true] %s45_s18 }
  0x17   :  { %s639_s21 = scalar_lea.hbm %s926_s0, 64 }
  0x18   :  { %p640_p8 = scmp.ne.s32.totalorder %s926_s0, %s639_s21  ;;  %p643_p9 = scmp.lt.u32.totalorder %s639_s21, %s926_s0 }
  0x1a   :  { %p645_p10 = pnand %p643_p9, %p640_p8 }
  0x1c   :  { %648 = shalt.err (!%p645_p10)
}
  0x1d   :  { %s649_s1 = scalar_lea.vmem %s25_s16, 64  ;;  %p654_p12 = scmp.lt.s32.totalorder %s25_s16, %s25_s16 }
  0x1e   :  { %p650_p11 = scmp.ne.s32.totalorder %s25_s16, %s649_s1  ;;  %p655_p13 = scmp.lt.s32.totalorder %s649_s1, %s649_s1 }
  0x20   :  { %p656_p0 = por %p655_p13, %p654_p12 }
  0x22   :  { %p657_p1 = pnand %p656_p0, %p650_p11 }
  0x24   :  { %660 = shalt.err (!%p657_p1)
}
  0x25   :  { %27 = dma.hbm_to_vmem [thread:$0]  %s926_s0, 64, %s25_s16, [#allocation3]  }
  0x26   :  { %s661_s30 = scalar_lea.hbm %s928_s2, 1024 }
  0x27   :  { %p662_p2 = scmp.ne.s32.totalorder %s928_s2, %s661_s30  ;;  %p665_p3 = scmp.lt.u32.totalorder %s661_s30, %s928_s2 }
  0x29   :  { %p667_p4 = pnand %p665_p3, %p662_p2 }
  0x2b   :  { %670 = shalt.err (!%p667_p4)
}
  0x2c   :  { %s671_s14 = scalar_lea.vmem %s46_s18, 1024  ;;  %p676_p6 = scmp.lt.s32.totalorder %s46_s18, %s46_s18 }
  0x2d   :  { %p672_p5 = scmp.ne.s32.totalorder %s46_s18, %s671_s14  ;;  %p677_p7 = scmp.lt.s32.totalorder %s671_s14, %s671_s14 }
  0x2f   :  { %p678_p8 = por %p677_p7, %p676_p6 }
  0x31   :  { %p679_p9 = pnand %p678_p8, %p672_p5 }
  0x33   :  { %682 = shalt.err (!%p679_p9)
}
  0x34   :  { %51 = dma.hbm_to_vmem [thread:$0]  %s928_s2, 1024, %s46_s18, [#allocation6], %s760_s11, %s760_s11, %s761_s12  }
  0x35   :  { %s764_s16 = smov [#allocation8]   ;;  %s683_s21 = scalar_lea.hbm %s930_s4, 1024 }
  0x36   :  { %s59_s17 = sshll.u32 %s764_s16, 4  ;;  %p684_p10 = scmp.ne.s32.totalorder %s930_s4, %s683_s21  ;;  %s60_s17 = int_to_ptr.vmem [resolvable:$true] %s59_s17 }
  0x37   :  { %p687_p11 = scmp.lt.u32.totalorder %s683_s21, %s930_s4 }
  0x39   :  { %p689_p12 = pnand %p687_p11, %p684_p10 }
  0x3b   :  { %692 = shalt.err (!%p689_p12)
}
  0x3c   :  { %s693_s1 = scalar_lea.vmem %s60_s17, 1024  ;;  %p698_p0 = scmp.lt.s32.totalorder %s60_s17, %s60_s17 }
  0x3d   :  { %p694_p13 = scmp.ne.s32.totalorder %s60_s17, %s693_s1  ;;  %p699_p1 = scmp.lt.s32.totalorder %s693_s1, %s693_s1 }
  0x3f   :  { %p700_p2 = por %p699_p1, %p698_p0 }
  0x41   :  { %p701_p3 = pnand %p700_p2, %p694_p13 }
  0x43   :  { %704 = shalt.err (!%p701_p3)
}
  0x44   :  { %65 = dma.hbm_to_vmem [thread:$0]  %s930_s4, 1024, %s60_s17, [#allocation9], %s760_s11, %s760_s11, %s761_s12  }
  0x45   :  { %749 = dma.done.wait [#allocation3], 64  }
  0x46   :  { %750 = vsyncadd [#allocation3], 4294967232 }
  0x47   :  { %751 = dma.done.wait [#allocation6], 2048  }
  0x48   :  { %752 = vsyncadd [#allocation6], 4294965248 }
  0x49   :  { %753 = dma.done.wait [#allocation9], 1024  }
  0x4a   :  { %754 = vsyncadd [#allocation9], 4294966272  ;;  %v765_v0 = vmov 0.0   ;;  %vm766_vm0 = vmmov 0   ;;  %v593_v1 = vld [vmem:[#allocation5] sm:$0xff]   ;;  %v594_v2 = vld [vmem:[#allocation5 + $0x8] sm:$0xff]  }
  0x4b   :  { %523 = vmatprep.subr.bf16.mxu0 %v765_v0  ;;  %539 = vmatprep.mubr.msk.bf16.mxu0 %vm766_vm0, %v765_v0  ;;  %v595_v3 = vld [vmem:[#allocation5 + $0x10] sm:$0xff]   ;;  %v601_v4 = vld [vmem:[#allocation7] sm:$0xff]   ;;  %v596_v5 = vld [vmem:[#allocation5 + $0x18] sm:$0xff]   ;;  %s767_s27 = smov [#allocation10]  }
  0x4c   :  { %543 = vmatprep.subr.bf16.mxu1 %v765_v0  ;;  %559 = vmatprep.mubr.msk.bf16.mxu1 %vm766_vm0, %v765_v0  ;;  %v602_v6 = vld [vmem:[#allocation7 + $0x8] sm:$0xff]   ;;  %v597_v7 = vld [vmem:[#allocation5 + $0x20] sm:$0xff]   ;;  %v603_v8 = vld [vmem:[#allocation7 + $0x10] sm:$0xff]   ;;  %s445_s28 = sshll.u32 %s767_s27, 4  ;;  %s446_s28 = int_to_ptr.vmem [resolvable:$true] %s445_s28 }
  0x4d   :  { %524 = vmatpush3.bf16.msra.mxu0 %v593_v1  ;;  %544 = vmatpush3.bf16.msra.mxu1 %v601_v4  ;;  %v598_v9 = vld [vmem:[#allocation5 + $0x28] sm:$0xff]   ;;  %v604_v10 = vld [vmem:[#allocation7 + $0x18] sm:$0xff]   ;;  %v599_v11 = vld [vmem:[#allocation5 + $0x30] sm:$0xff]   ;;  %p710_p5 = scmp.lt.s32.totalorder %s446_s28, %s446_s28 }
  0x4e   :  { %525 = vmatprep.subr.bf16.mxu0 %v765_v0  ;;  %545 = vmatprep.subr.bf16.mxu1 %v765_v0  ;;  %v605_v12 = vld [vmem:[#allocation7 + $0x20] sm:$0xff]   ;;  %v600_v13 = vld [vmem:[#allocation5 + $0x38] sm:$0xff]   ;;  %v606_v14 = vld [vmem:[#allocation7 + $0x28] sm:$0xff]  }
  0x4f   :  { %v81_v15 = vld [vmem:[#allocation2] sm:$0xf]  ;;  %v607_v16 = vld [vmem:[#allocation7 + $0x30] sm:$0xff]   ;;  %v609_v18 = vld [vmem:[#allocation8] sm:$0xff]  }
  0x50   :  { %v608_v17 = vld [vmem:[#allocation7 + $0x38] sm:$0xff]   ;;  %v610_v19 = vld [vmem:[#allocation8 + $0x8] sm:$0xff]   ;;  %v611_v20 = vld [vmem:[#allocation8 + $0x10] sm:$0xff]  }
  0x51   :  { %526 = vmatpush3.bf16.msra.mxu0 %v594_v2  ;;  %546 = vmatpush3.bf16.msra.mxu1 %v602_v6  ;;  %v612_v21 = vld [vmem:[#allocation8 + $0x18] sm:$0xff]   ;;  %v613_v22 = vld [vmem:[#allocation8 + $0x20] sm:$0xff]   ;;  %v614_v23 = vld [vmem:[#allocation8 + $0x28] sm:$0xff]  }
  0x52   :  { %527 = vmatprep.subr.bf16.mxu0 %v765_v0  ;;  %547 = vmatprep.subr.bf16.mxu1 %v765_v0  ;;  %v615_v29 = vld [vmem:[#allocation8 + $0x30] sm:$0xff]   ;;  %v616_v30 = vld [vmem:[#allocation8 + $0x38] sm:$0xff]  }
  0x53   :  { %v478_v31 = vld [vmem:[%s929_s3] ss:$0 sm:$0xff]  ;;  %s705_s3 = scalar_lea.vmem %s446_s28, 128 }
  0x54   :  { %v487_v39 = vld [vmem:[%s931_s5] ss:$0 sm:$0xff]  ;;  %p706_p4 = scmp.ne.s32.totalorder %s446_s28, %s705_s3  ;;  %p711_p6 = scmp.lt.s32.totalorder %s705_s3, %s705_s3 }
  0x55   :  { %528 = vmatpush3.bf16.msra.mxu0 %v595_v3  ;;  %548 = vmatpush3.bf16.msra.mxu1 %v603_v8 }
  0x56   :  { %529 = vmatprep.subr.bf16.mxu0 %v765_v0  ;;  %549 = vmatprep.subr.bf16.mxu1 %v765_v0  ;;  %p712_p7 = por %p711_p6, %p710_p5 }
  0x58   :  { %p713_p8 = pnand %p712_p7, %p706_p4 }
  0x59   :  { %530 = vmatpush3.bf16.msra.mxu0 %v596_v5  ;;  %550 = vmatpush3.bf16.msra.mxu1 %v604_v10 }
  0x5a   :  { %531 = vmatprep.subr.bf16.mxu0 %v765_v0  ;;  %551 = vmatprep.subr.bf16.mxu1 %v765_v0 }
  0x5d   :  { %532 = vmatpush3.bf16.msra.mxu0 %v597_v7  ;;  %552 = vmatpush3.bf16.msra.mxu1 %v605_v12 }
  0x5e   :  { %533 = vmatprep.subr.bf16.mxu0 %v765_v0  ;;  %553 = vmatprep.subr.bf16.mxu1 %v765_v0 }
  0x61   :  { %534 = vmatpush3.bf16.msra.mxu0 %v598_v9  ;;  %554 = vmatpush3.bf16.msra.mxu1 %v606_v14 }
  0x62   :  { %535 = vmatprep.subr.bf16.mxu0 %v765_v0  ;;  %555 = vmatprep.subr.bf16.mxu1 %v765_v0 }
  0x65   :  { %536 = vmatpush3.bf16.msra.mxu0 %v599_v11  ;;  %556 = vmatpush3.bf16.msra.mxu1 %v607_v16 }
  0x66   :  { %537 = vmatprep.subr.bf16.mxu0 %v765_v0  ;;  %557 = vmatprep.subr.bf16.mxu1 %v765_v0 }
  0x69   :  { %538 = vmatpush3.bf16.msra.mxu0 %v600_v13  ;;  %558 = vmatpush3.bf16.msra.mxu1 %v608_v17 }
  0x6a   :  { %563 = vmatprep.subr.bf16.mxu0 %v765_v0 }
  0x6c   :  { %540 = vmatmul.mubr.bf16.vlgmr.msra.gmra.mrb[0].mxu0 %v81_v15 }
  0x6d   :  { %579 = vmatprep.mubr.msk.bf16.mxu0 %vm766_vm0, %v765_v0  ;;  %564 = vmatpush3.bf16.msra.mxu0 %v609_v18 }
  0x6e   :  { %565 = vmatprep.subr.bf16.mxu0 %v765_v0 }
  0x71   :  { %566 = vmatpush3.bf16.msra.mxu0 %v610_v19 }
  0x72   :  { %567 = vmatprep.subr.bf16.mxu0 %v765_v0 }
  0x75   :  { %568 = vmatpush3.bf16.msra.mxu0 %v611_v20 }
  0x76   :  { %569 = vmatprep.subr.bf16.mxu0 %v765_v0 }
  0x79   :  { %570 = vmatpush3.bf16.msra.mxu0 %v612_v21 }
  0x7a   :  { %571 = vmatprep.subr.bf16.mxu0 %v765_v0 }
  0x7d   :  { %572 = vmatpush3.bf16.msra.mxu0 %v613_v22 }
  0x7e   :  { %573 = vmatprep.subr.bf16.mxu0 %v765_v0 }
  0x81   :  { %574 = vmatpush3.bf16.msra.mxu0 %v614_v23 }
  0x82   :  { %575 = vmatprep.subr.bf16.mxu0 %v765_v0 }
  0x85   :  { %576 = vmatpush3.bf16.msra.mxu0 %v615_v29 }
  0x86   :  { %577 = vmatprep.subr.bf16.mxu0 %v765_v0 }
  0x89   :  { %578 = vmatpush3.bf16.msra.mxu0 %v616_v30 }
 0x13f   :  { %v180_v24 = vpop.f32.mrb[0].mxu0 }
 0x140   :  { %v186_v25 = vpack.c.bf16 %v180_v24, %v180_v24  ;;  %v541_v26 = vpop.f32.mrb[1].mxu0 }
 0x141   :  { %v183_v27 = vpop.f32.mrb[2].mxu0 }
 0x142   :  { %v542_v28 = vpop.f32.mrb[3].mxu0  ;;  %560 = vmatmul.mubr.bf16.vlgmr.msra.gmra.mrb[0].mxu1 %v186_v25 }
 0x215   :  { %v292_v32 = vpop.f32.mrb[0].mxu1 }
 0x216   :  { %v293_v33 = vadd.f32 %v478_v31, %v292_v32  ;;  %v561_v34 = vpop.f32.mrb[1].mxu1 }
 0x217   :  { %v295_v35 = vpop.f32.mrb[2].mxu1 }
 0x218   :  { %v298_v36 = vmax.f32 %v293_v33, 0.0  ;;  %v562_v37 = vpop.f32.mrb[3].mxu1 }
 0x21a   :  { %v299_v38 = vpack.c.bf16 %v298_v36, %v298_v36 }
 0x21c   :  { %580 = vmatmul.mubr.bf16.vlgmr.msra.gmra.mrb[4].mxu0 %v299_v38 }
 0x2ef   :  { %v405_v40 = vpop.f32.mrb[4].mxu0 }
 0x2f0   :  { %v406_v41 = vadd.f32 %v487_v39, %v405_v40  ;;  %v581_v42 = vpop.f32.mrb[5].mxu0 }
 0x2f1   :  { %v408_v43 = vpop.f32.mrb[6].mxu0 }
 0x2f2   :  { %v421_v44 = vrot.slane %v406_v41, 4  ;;  %v427_v45 = vmul.f32 %v406_v41, %v406_v41  ;;  %411 = vst [vmem:[#allocation10] sm:$0xff] %v406_v41  ;;  %v582_v46 = vpop.f32.mrb[7].mxu0 }
 0x2f3   :  { %716 = shalt.err (!%p713_p8)
}
 0x2f4   :  { %s717_s30 = scalar_lea.hbm %s932_s6, 128 }
 0x2f5   :  { %p718_p9 = scmp.ne.s32.totalorder %s932_s6, %s717_s30  ;;  %p721_p10 = scmp.lt.u32.totalorder %s717_s30, %s932_s6 }
 0x2f7   :  { %p723_p11 = pnand %p721_p10, %p718_p9 }
 0x2f9   :  { %726 = shalt.err (!%p723_p11)
}
 0x2fa   :  { %448 = dma.vmem_to_hbm [thread:$0]  %s446_s28, 128, %s932_s6, [#allocation4]   ;;  %v422_v47 = vadd.f32 %v421_v44, %v406_v41  ;;  %v428_v48 = vrot.slane %v427_v45, 4  ;;  %vm434_vm1 = vcmask 1040384   ;;  %vm436_vm2 = vcmask 1041408  }
 0x2fb   :  { %s768_s15 = smov [#allocation11]  }
 0x2fc   :  { %v423_v49 = vrot.slane %v422_v47, 2  ;;  %v429_v50 = vadd.f32 %v428_v48, %v427_v45  ;;  %s455_s16 = sshll.u32 %s768_s15, 4  ;;  %s456_s16 = int_to_ptr.vmem [resolvable:$true] %s455_s16 }
 0x2fd   :  { %s727_s6 = scalar_lea.vmem %s456_s16, 128  ;;  %p732_p13 = scmp.lt.s32.totalorder %s456_s16, %s456_s16 }
 0x2fe   :  { %v424_v51 = vadd.f32 %v423_v49, %v422_v47  ;;  %v430_v52 = vrot.slane %v429_v50, 2  ;;  %p728_p12 = scmp.ne.s32.totalorder %s456_s16, %s727_s6  ;;  %p733_p0 = scmp.lt.s32.totalorder %s727_s6, %s727_s6 }
 0x300   :  { %v425_v53 = vrot.slane %v424_v51, 1  ;;  %v431_v54 = vadd.f32 %v430_v52, %v429_v50  ;;  %p734_p1 = por %p733_p0, %p732_p13 }
 0x302   :  { %v432_v55 = vrot.slane %v431_v54, 1  ;;  %v426_v56 = vadd.f32 %v425_v53, %v424_v51  ;;  %p735_p2 = pnand %p734_p1, %p728_p12 }
 0x304   :  { %v433_v57 = vadd.f32 %v432_v55, %v431_v54 }
 0x306   :  { %v435_v58 = vsel %vm434_vm1, %v426_v56, %v433_v57 }
 0x307   :  { %v437_v59 = vsel %vm436_vm2, %v435_v58, 0.0 }
 0x308   :  { %438 = vst [vmem:[#allocation11] sm:$0xff] %v437_v59 }
 0x309   :  { %738 = shalt.err (!%p735_p2)
}
 0x30a   :  { %s739_s20 = scalar_lea.hbm %s933_s7, 128 }
 0x30b   :  { %p740_p3 = scmp.ne.s32.totalorder %s933_s7, %s739_s20  ;;  %p743_p4 = scmp.lt.u32.totalorder %s739_s20, %s933_s7 }
 0x30d   :  { %p745_p5 = pnand %p743_p4, %p740_p3 }
 0x30f   :  { %748 = shalt.err (!%p745_p5)
}
 0x310   :  { %458 = dma.vmem_to_hbm [thread:$0]  %s456_s16, 128, %s933_s7, [#allocation12]  }
 0x311   :  { %755 = dma.done.wait [#allocation4], 128  }
 0x312   :  { %756 = vsyncadd [#allocation4], 4294967168 }
 0x313   :  { %757 = dma.done.wait [#allocation12], 128  }
 0x314   :  { %758 = vsyncadd [#allocation12], 4294967168 }
 0x315   :  { %465 = vsyncpa [#allocation3], 1 }
 0x316   :  { %466 = vsyncpa [#allocation6], 1 }
 0x317   :  { %467 = vsyncpa [#allocation9], 1 }
 0x318   :  { %468 = vsyncpa [#allocation4], 1 }
 0x319   :  { %469 = vsyncpa [#allocation12], 1 }

</bundles_post_ra>
